<compile_context>
chip_gen: v7x
topology: tpu7x:2x2x1
jax: 0.10.0
libtpu: 0.0.40
codegen_flags: <defaults>
</compile_context>

<pallas_src>
import math

import jax
import jax.numpy as jnp
from jax.experimental import pallas as pl
from jax.experimental.pallas import tpu as pltpu


# ------------------------------------------------------------------ helpers --

def _round_up(x, m):
    return (x + m - 1) // m * m


def _cdiv(a, b):
    return (a + b - 1) // b


def _vmem_capacity_bytes():
    try:
        return int(pltpu.get_tpu_info().vmem_capacity_bytes)
    except Exception:
        return 128 * 1024 * 1024  # v5e / v6e physical VMEM


_SQRT_HALF = 1.0 / math.sqrt(2.0)  # hoisted constant


def _gelu_exact(h):
    # nn.GELU() default (approximate='none'): 0.5*x*(1+erf(x/sqrt(2))), in f32.
    return 0.5 * h * (1.0 + jax.lax.erf(h * _SQRT_HALF))


# ------------------------------------------------------------------ kernels --

def _ffn_kernel_resident(x_ref, w1_ref, b1_ref, w2_ref, b2_ref, o_ref):
    # Whole W1/W2 live in VMEM (constant index maps) -> single fused pass per row tile.
    h = jnp.dot(x_ref[...], w1_ref[...], preferred_element_type=jnp.float32)
    h = _gelu_exact(h + b1_ref[...])
    y = jnp.dot(h.astype(w2_ref.dtype), w2_ref[...],
                preferred_element_type=jnp.float32)
    o_ref[...] = (y + b2_ref[...]).astype(o_ref.dtype)
    # TODO(synk): training-mode dropout mask would be applied here.


def _ffn_kernel_streamed(x_ref, w1_ref, b1_ref, w2_ref, b2_ref, o_ref, acc_ref):
    j = pl.program_id(1)  # hidden-dim chunk index (reduction axis)

    @pl.when(j == 0)
    def _():
        acc_ref[...] = jnp.zeros_like(acc_ref)

    h = jnp.dot(x_ref[...], w1_ref[...], preferred_element_type=jnp.float32)
    h = _gelu_exact(h + b1_ref[...])
    acc_ref[...] += jnp.dot(h.astype(w2_ref.dtype), w2_ref[...],
                            preferred_element_type=jnp.float32)

    @pl.when(j == pl.num_programs(1) - 1)
    def _():
        o_ref[...] = (acc_ref[...] + b2_ref[...]).astype(o_ref.dtype)


# ------------------------------------------------------------ tiling search --

_TM_CANDIDATES = (1024, 768, 512, 384, 256, 128, 64, 32, 16, 8)


def _resident_need(tm, D, H, bpe, obpe):
    return (2 * 2 * D * H * bpe          # W1 + W2 (count double buffers to be safe)
            + 2 * tm * D * bpe           # x tiles (double-buffered)
            + 2 * tm * D * obpe          # out tiles
            + tm * H * (4 + bpe)         # f32 fc1/GELU intermediate + cast copy
            + 2 * 2 * (H + D) * 4)       # biases


def _streamed_need(tm, th, D, bpe, obpe):
    return (2 * tm * D * bpe             # x tiles
            + 2 * D * th * bpe           # W1 chunks
            + 2 * th * D * bpe           # W2 chunks
            + 2 * tm * D * obpe          # out tiles
            + tm * D * 4                 # f32 accumulator scratch
            + tm * th * (4 + bpe)        # intermediate + cast copy
            + 2 * 2 * (th + D) * 4)      # biases


def _choose_h_tiling(H, target):
    """Return (th, H_pad) with th | H_pad and H_pad >= H; th a 128-multiple or H."""
    target = max(128, (target // 128) * 128)
    if H <= target:
        return H, H
    for cand in range(target, max(128, target // 2) - 1, -128):
        if H % cand == 0:
            return cand, H
    return target, _round_up(H, target)   # ragged H: zero-pad (exact — see wrapper)


# ------------------------------------------------------------------ wrapper --

def feed_forward(x, w1, b1, w2, b2, *, tm=None, h_chunk=1536):
    """Fused fc1 -> GELU -> fc2 (eval-mode dropout == identity).

    x: (N, D). w1: (D, H), b1: (H,), w2: (H, D), b2: (D,). Returns (N, D).
    MXU compute dtype follows w1/w2's dtype (store them in bf16 once — see
    cast_weights_bf16 — to avoid per-call cast traffic); accumulation is f32.
    """
    N, D = x.shape
    H = w1.shape[1]
    out_dtype = x.dtype

    cdtype = w1.dtype
    if x.dtype != cdtype:
        x = x.astype(cdtype)             # cheap: N*D elements only
    bpe = jnp.dtype(cdtype).itemsize
    obpe = jnp.dtype(out_dtype).itemsize
    row_align = 16 if bpe == 2 else 8    # bf16 packs 2 rows / sublane

    vmem_cap = _vmem_capacity_bytes()
    budget = int(0.80 * vmem_cap)        # headroom for compiler internal scratch
    tm_cands = [t for t in _TM_CANDIDATES if t % row_align == 0]
    tm_pref = _round_up(tm, row_align) if tm else None

    # --- pick tiling: weights-resident (preferred) or H-streamed -------------
    resident_tm = next(
        (t for t in tm_cands if _resident_need(t, D, H, bpe, obpe) <= budget), None)

    if resident_tm is not None:
        streamed = False
        tm_eff = resident_tm if tm_pref is None else min(resident_tm, tm_pref)
        th, H_pad = H, H
    else:
        streamed = True
        th_targets = []
        tt = max(128, (h_chunk // 128) * 128)
        while tt > 128:
            th_targets.append(tt)
            tt = max(128, ((tt // 2) // 128) * 128)
        th_targets.append(128)

        pick = None
        for t in tm_cands:               # tm is the primary AI lever when streaming
            for tgt in th_targets:
                th_c, hp_c = _choose_h_tiling(H, tgt)
                if _streamed_need(t, th_c, D, bpe, obpe) <= budget:
                    pick = (t, th_c, hp_c)
                    break
            if pick is not None:
                break
        if pick is None:                 # last resort: minimal tiles
            tm_eff = row_align
            th, H_pad = _choose_h_tiling(H, 128)
        else:
            tm_eff, th, H_pad = pick
        if tm_pref is not None:
            tm_eff = max(row_align, min(tm_eff, tm_pref))

    # --- row tiling: clamp to data; keep >= 2 tiles on the parallel axis -----
    n_rows = _round_up(N, row_align)
    tm_eff = min(tm_eff, n_rows)
    if n_rows >= 2 * row_align:
        tm_eff = min(tm_eff, max(row_align, _round_up(_cdiv(n_rows, 2), row_align)))
    n_pad = _round_up(N, tm_eff)
    if n_pad != N:
        x = jnp.pad(x, ((0, n_pad - N), (0, 0)))

    # Ragged H fallback: zero-padding is exact (GELU(0)=0 and padded W2 rows are 0).
    if H_pad != H:
        w1 = jnp.pad(w1, ((0, 0), (0, H_pad - H)))
        b1 = jnp.pad(b1, ((0, H_pad - H),))
        w2 = jnp.pad(w2, ((0, H_pad - H), (0, 0)))

    b1_2d = b1.reshape(1, H_pad).astype(jnp.float32)
    b2_2d = b2.reshape(1, D).astype(jnp.float32)

    # --- VMEM limit (generation-aware) ----------------------------------------
    need = (_streamed_need(tm_eff, th, D, bpe, obpe) if streamed
            else _resident_need(tm_eff, D, H, bpe, obpe))
    vmem_limit = int(min(max(need + need // 4, 32 * 1024 * 1024),
                         int(0.85 * vmem_cap)))
    vmem_limit = int(min(max(vmem_limit, need), vmem_cap))

    # --- grid / specs ----------------------------------------------------------
    if streamed:
        grid = (n_pad // tm_eff, H_pad // th)
        in_specs = [
            pl.BlockSpec((tm_eff, D), lambda i, j: (i, 0)),   # x row tile
            pl.BlockSpec((D, th), lambda i, j: (0, j)),       # W1 H-chunk
            pl.BlockSpec((1, th), lambda i, j: (0, j)),       # b1 H-chunk
            pl.BlockSpec((th, D), lambda i, j: (j, 0)),       # W2 H-chunk
            pl.BlockSpec((1, D), lambda i, j: (0, 0)),        # b2
        ]
        out_specs = pl.BlockSpec((tm_eff, D), lambda i, j: (i, 0))
        scratch_shapes = [pltpu.VMEM((tm_eff, D), jnp.float32)]
        kernel = _ffn_kernel_streamed
        dims = ("parallel", "arbitrary")
        weight_bytes = (n_pad // tm_eff) * 2 * D * H_pad * bpe  # re-read per row tile
    else:
        grid = (n_pad // tm_eff,)
        in_specs = [
            pl.BlockSpec((tm_eff, D), lambda i: (i, 0)),      # x row tile
            pl.BlockSpec((D, H), lambda i: (0, 0)),           # whole W1, DMA'd once
            pl.BlockSpec((1, H), lambda i: (0, 0)),           # b1
            pl.BlockSpec((H, D), lambda i: (0, 0)),           # whole W2, DMA'd once
            pl.BlockSpec((1, D), lambda i: (0, 0)),           # b2
        ]
        out_specs = pl.BlockSpec((tm_eff, D), lambda i: (i, 0))
        scratch_shapes = []
        kernel = _ffn_kernel_resident
        dims = ("parallel",)
        weight_bytes = 2 * D * H * bpe                         # loaded exactly once

    cost = pl.CostEstimate(
        flops=4 * n_pad * D * H_pad,
        transcendentals=n_pad * H_pad,
        bytes_accessed=(n_pad * D * bpe          # x read
                        + weight_bytes           # weights (incl. any re-reads)
                        + n_pad * D * obpe       # output write
                        + (H_pad + D) * 4),      # biases
    )

    out = pl.pallas_call(
        kernel,
        out_shape=jax.ShapeDtypeStruct((n_pad, D), out_dtype),
        grid_spec=pltpu.PrefetchScalarGridSpec(
            num_scalar_prefetch=0,
            grid=grid,
            in_specs=in_specs,
            out_specs=out_specs,
            scratch_shapes=scratch_shapes,
        ),
        compiler_params=pltpu.CompilerParams(
            dimension_semantics=dims,
            vmem_limit_bytes=vmem_limit,
        ),
        cost_estimate=cost,
    )(x, w1, b1_2d, w2, b2_2d)

    return out[:N] if n_pad != N else out


def feed_forward_module(x_bsd, params):
    """x_bsd: (B, S, D) — flatten tokens, run the fused kernel, reshape back."""
    B, S, D = x_bsd.shape
    out = feed_forward(x_bsd.reshape(B * S, D), params["w1"], params["b1"],
                       params["w2"], params["b2"])
    return out.reshape(B, S, D)


def cast_weights_bf16(params):
    """Cast weights to bf16 ONCE (cache the result outside the hot path); biases stay f32."""
    return {"w1": params["w1"].astype(jnp.bfloat16), "b1": params["b1"],
            "w2": params["w2"].astype(jnp.bfloat16), "b2": params["b2"]}


def init_params(key, emb_dim):
    """Deterministic init mimicking nn.Linear (uniform +- 1/sqrt(fan_in))."""
    inner = emb_dim * 4
    k1, k2, k3, k4 = jax.random.split(key, 4)
    lim1 = 1.0 / math.sqrt(emb_dim)
    lim2 = 1.0 / math.sqrt(inner)
    # stored as (in_features, out_features) == transpose of PyTorch's (out, in)
    w1 = jax.random.uniform(k1, (emb_dim, inner), jnp.float32, -lim1, lim1)
    b1 = jax.random.uniform(k2, (inner,), jnp.float32, -lim1, lim1)
    w2 = jax.random.uniform(k3, (inner, emb_dim), jnp.float32, -lim2, lim2)
    b2 = jax.random.uniform(k4, (emb_dim,), jnp.float32, -lim2, lim2)
    return {"w1": w1, "b1": b1, "w2": w2, "b2": b2}


def _reference(x_bsd, params):
    """Pure-JAX reference of the PyTorch forward (eval mode)."""
    h = x_bsd @ params["w1"] + params["b1"]
    h = jax.nn.gelu(h, approximate=False)
    return h @ params["w2"] + params["b2"]


if __name__ == "__main__":
    key = jax.random.PRNGKey(0)
    k_x, k_p = jax.random.split(key)

    B, S, EMB = 2, 8, 32          # small emb_dim (module default 768) for the demo
    x = jax.random.normal(k_x, (B, S, EMB), jnp.float32)
    params = init_params(k_p, EMB)
    ref = _reference(x, params)

    # f32 weights (exact parity with the PyTorch fp32 module, eval mode).
    out_f32 = jax.block_until_ready(feed_forward_module(x, params))
    assert out_f32.shape == (B, S, EMB)
    assert jnp.allclose(out_f32, ref, atol=1e-5, rtol=1e-5), "f32 mismatch vs reference"

    # bf16 MXU operands: weights cast ONCE outside the per-call path, f32 accumulation.
    params_bf16 = cast_weights_bf16(params)
    out_bf16 = jax.block_until_ready(feed_forward_module(x, params_bf16))
    assert out_bf16.shape == (B, S, EMB)
    assert jnp.allclose(out_bf16, ref, atol=5e-2, rtol=5e-2), "bf16 mismatch vs reference"

    print("KERNEL_OK")
</pallas_src>

<mosaic_0001>
module attributes {stable_mosaic.version = 11 : i64} {
  func.func @_ffn_kernel_resident(%arg0: i32, %arg1: memref<8x32xf32, #tpu.memory_space<vmem>>, %arg2: memref<32x128xf32, #tpu.memory_space<vmem>>, %arg3: memref<1x128xf32, #tpu.memory_space<vmem>>, %arg4: memref<128x32xf32, #tpu.memory_space<vmem>>, %arg5: memref<1x32xf32, #tpu.memory_space<vmem>>, %arg6: memref<8x32xf32, #tpu.memory_space<vmem>>) attributes {dimension_semantics = [#tpu.dimension_semantics<parallel>], iteration_bounds = array<i64: 2>, scalar_prefetch = 0 : i64, scratch_operands = 0 : i64, tpu.core_type = #tpu.core_type<tc>, window_params = [{transform_indices = @transform_0, window_bounds = array<i64: 8, 32>}, {pipeline_mode = #tpu.pipeline_mode<synchronous>, transform_indices = @transform_1, window_bounds = array<i64: 32, 128>}, {pipeline_mode = #tpu.pipeline_mode<synchronous>, transform_indices = @transform_2, window_bounds = array<i64: 1, 128>}, {pipeline_mode = #tpu.pipeline_mode<synchronous>, transform_indices = @transform_3, window_bounds = array<i64: 128, 32>}, {pipeline_mode = #tpu.pipeline_mode<synchronous>, transform_indices = @transform_4, window_bounds = array<i64: 1, 32>}, {transform_indices = @transform_5, window_bounds = array<i64: 8, 32>}]} {
    %c0 = arith.constant 0 : index
    %c0_0 = arith.constant 0 : index
    %0 = vector.load %arg1[%c0, %c0_0] : memref<8x32xf32, #tpu.memory_space<vmem>>, vector<8x32xf32>
    %c0_1 = arith.constant 0 : index
    %c0_2 = arith.constant 0 : index
    %1 = vector.load %arg2[%c0_1, %c0_2] : memref<32x128xf32, #tpu.memory_space<vmem>>, vector<32x128xf32>
    %cst = arith.constant dense<0.000000e+00> : vector<8x128xf32>
    %2 = tpu.matmul %0, %1, %cst {dimension_numbers = #tpu.dot_dimension_numbers<[1], [0], [0], [1], [0, 0, 1, 1], [], []>} : vector<8x32xf32>, vector<32x128xf32>, vector<8x128xf32> -> vector<8x128xf32>
    %c0_3 = arith.constant 0 : index
    %c0_4 = arith.constant 0 : index
    %3 = vector.load %arg3[%c0_3, %c0_4] : memref<1x128xf32, #tpu.memory_space<vmem>>, vector<1x128xf32>
    %4 = vector.broadcast %3 : vector<1x128xf32> to vector<8x128xf32>
    %5 = arith.addf %2, %4 : vector<8x128xf32>
    %cst_5 = arith.constant 5.000000e-01 : f32
    %6 = vector.broadcast %cst_5 : f32 to vector<8x128xf32>
    %7 = arith.mulf %6, %5 : vector<8x128xf32>
    %cst_6 = arith.constant 0.707106769 : f32
    %8 = vector.broadcast %cst_6 : f32 to vector<8x128xf32>
    %9 = arith.mulf %5, %8 : vector<8x128xf32>
    %10 = math.erf %9 : vector<8x128xf32>
    %cst_7 = arith.constant 1.000000e+00 : f32
    %11 = vector.broadcast %cst_7 : f32 to vector<8x128xf32>
    %12 = arith.addf %11, %10 : vector<8x128xf32>
    %13 = arith.mulf %7, %12 : vector<8x128xf32>
    %c0_8 = arith.constant 0 : index
    %c0_9 = arith.constant 0 : index
    %14 = vector.load %arg4[%c0_8, %c0_9] : memref<128x32xf32, #tpu.memory_space<vmem>>, vector<128x32xf32>
    %cst_10 = arith.constant dense<0.000000e+00> : vector<8x32xf32>
    %15 = tpu.matmul %13, %14, %cst_10 {dimension_numbers = #tpu.dot_dimension_numbers<[1], [0], [0], [1], [0, 0, 1, 1], [], []>} : vector<8x128xf32>, vector<128x32xf32>, vector<8x32xf32> -> vector<8x32xf32>
    %c0_11 = arith.constant 0 : index
    %c0_12 = arith.constant 0 : index
    %16 = vector.load %arg5[%c0_11, %c0_12] : memref<1x32xf32, #tpu.memory_space<vmem>>, vector<1x32xf32>
    %17 = vector.broadcast %16 : vector<1x32xf32> to vector<8x32xf32>
    %18 = arith.addf %15, %17 : vector<8x32xf32>
    %c0_13 = arith.constant 0 : index
    %c0_14 = arith.constant 0 : index
    %19 = vector.load %arg6[%c0_13, %c0_14] : memref<8x32xf32, #tpu.memory_space<vmem>>, vector<8x32xf32>
    tpu.vector_store %arg6[%c0_13, %c0_14], %18 {strides = array<i32>} : memref<8x32xf32, #tpu.memory_space<vmem>>, vector<8x32xf32>,
    return
  }
  func.func @transform_0(%arg0: i32) -> (i32, i32) {
    %c0_i32 = arith.constant 0 : i32
    %c0_i32_0 = arith.constant 0 : i32
    return %arg0, %c0_i32 : i32, i32
  }
  func.func @transform_1(%arg0: i32) -> (i32, i32) {
    %c0_i32 = arith.constant 0 : i32
    %c0_i32_0 = arith.constant 0 : i32
    %c0_i32_1 = arith.constant 0 : i32
    return %c0_i32, %c0_i32_0 : i32, i32
  }
  func.func @transform_2(%arg0: i32) -> (i32, i32) {
    %c0_i32 = arith.constant 0 : i32
    %c0_i32_0 = arith.constant 0 : i32
    %c0_i32_1 = arith.constant 0 : i32
    return %c0_i32, %c0_i32_0 : i32, i32
  }
  func.func @transform_3(%arg0: i32) -> (i32, i32) {
    %c0_i32 = arith.constant 0 : i32
    %c0_i32_0 = arith.constant 0 : i32
    %c0_i32_1 = arith.constant 0 : i32
    return %c0_i32, %c0_i32_0 : i32, i32
  }
  func.func @transform_4(%arg0: i32) -> (i32, i32) {
    %c0_i32 = arith.constant 0 : i32
    %c0_i32_0 = arith.constant 0 : i32
    %c0_i32_1 = arith.constant 0 : i32
    return %c0_i32, %c0_i32_0 : i32, i32
  }
  func.func @transform_5(%arg0: i32) -> (i32, i32) {
    %c0_i32 = arith.constant 0 : i32
    %c0_i32_0 = arith.constant 0 : i32
    return %arg0, %c0_i32 : i32, i32
  }
}

</mosaic_0001>

<bundles_post_ra>
// kernel: tpu_custom_call.1
= control target key start
LH: loop header
LB: loop body
LE: loop exit
PB: predicated region body
PF: predicated region fallthrough
CT: control target
= control target key end

     0   :  { %10 = vsyncpa [#allocation3], 0  ;;  %s899_s0 = inlined_call_operand.vmem [shape: f32[16,32], index: 0, kind: input, shape index: {}]   ;;  %s900_s1 = inlined_call_operand.vmem [shape: f32[32,128], index: 1, kind: input, shape index: {}]   ;;  %s901_s2 = inlined_call_operand.vmem [shape: f32[1,128], index: 2, kind: input, shape index: {}]   ;;  %s902_s3 = inlined_call_operand.vmem [shape: f32[128,32], index: 3, kind: input, shape index: {}]   ;;  %s903_s4 = inlined_call_operand.vmem [shape: f32[1,32], index: 4, kind: input, shape index: {}]   ;;  %s904_s5 = inlined_call_operand.hbm [shape: f32[16,32], index: 5, kind: output, shape index: {}]  }
   0x1   :  { %12 = vsyncpa [#allocation3 + $0x1], 0  ;;  %s731_s18 = smov 0   ;;  %s733_s19 = smov 0  }
   0x2   :  { %s735_s20 = smov 0   ;;  %s737_s21 = smov 0  }
   0x3 LB: > { %s752_s22 = sadd.s32 4294967295, %s695_s21   ;;  %s478_s23 = sadd.s32 4294967294, %s695_s21   ;;  %s695_s21 = sphi %s737_s21, %s910_s21   ;;  %s691_s20 = sphi %s735_s20, %s909_s20   ;;  %s687_s19 = sphi %s733_s19, %s908_s19   ;;  %s683_s18 = sphi %s731_s18, %s907_s18  }
   0x4   : > { %s756_s24 = sadd.s32 1, %s695_s21   ;;  %s135_s25 = sadd.s32 1, %s691_s20 }
   0x5   : > { %s132_s26 = ssub.s32 %s695_s21, %s756_s24  ;;  %p145_p0 = scmp.ne.s32.totalorder %s691_s20, %s687_s19 }
   0x6   : > { %p133_p1 = scmp.eq.s32.totalorder %s132_s26, 0  ;;  %p146_p2 = scmp.eq.s32.totalorder %s752_s22, 1 }
   0x7   : > { %p151_p3 = scmp.ne.s32.totalorder %s687_s19, %s683_s18  ;;  %p152_p4 = scmp.eq.s32.totalorder %s478_s23, 1 }
   0x8   : > { %s767_s27 = scalar_select %p133_p1, %s691_s20, %s135_s25  }
   0x9   : > { %p769_p5 = por %p146_p2, %p145_p0  ;;  %p773_p6 = por %p152_p4, %p151_p3 }
   0xa   : > { %p481_p7 = scmp.ge.s32.totalorder %s695_s21, 1  ;;  %p189_p8 = scmp.lt.s32.totalorder %s695_s21, 3 }
   0xc   : > { %p190_p9 = pnand %p481_p7, %p189_p8 }
   0xd   : > { %v221_v0 = vld [vmem:[%s900_s1] sm:$0xff] (!%p190_p9)  ;;  %v222_v1 = vld [vmem:[%s900_s1 + $0x8] sm:$0xff] (!%p190_p9)  ;;  %v223_v2 = vld [vmem:[%s900_s1 + $0x10] sm:$0xff] (!%p190_p9)  ;;  %v697_v3 = vmov (!%p190_p9), 0.0|0.0   ;;  %vm698_vm0 = vmmov (!%p190_p9), 0   ;;  %v699_v6 = vmov (!%p190_p9), 0.0  }
   0xe   : > { %193 = sbr.rel (%p190_p9) target bundleno = 485 (0x1e5), region = 40  ;;  %559 = vmatprep.subr.bf16.mxu0 (!%p190_p9), %v697_v3  ;;  %v560_v4 = vpack.c.bf16 (!%p190_p9), %v222_v1, %v221_v0  ;;  %v224_v5 = vld [vmem:[%s900_s1 + $0x18] sm:$0xff] (!%p190_p9)  ;;  %521 = vmatprep.mubr.msk.f32.mxu0 (!%p190_p9), %vm698_vm0, %v699_v6  ;;  %p216_p10 = scmp.lt.s32.totalorder (!%p190_p9), %s752_s22, 1  ;;  %v311_v7 = vld [vmem:[%s902_s3] sm:$0xff] (!%p190_p9)  ;;  %v312_v8 = vld [vmem:[%s902_s3 + $0x8] sm:$0xff] (!%p190_p9)  ;;  %vm232_vm1 = vcmask (!%p190_p9), 261120  }
   0xf   : > { %565 = vmatprep.subr.bf16.mxu1 (!%p190_p9), %v697_v3  ;;  %v566_v9 = vpack.c.bf16 (!%p190_p9), %v312_v8, %v311_v7  ;;  %v313_v10 = vld [vmem:[%s902_s3 + $0x10] sm:$0xff] (!%p190_p9)  ;;  %v314_v11 = vld [vmem:[%s902_s3 + $0x18] sm:$0xff] (!%p190_p9)  ;;  %556 = vmatprep.mubr.msk.f32.mxu1 (!%p190_p9), %vm698_vm0, %v699_v6  ;;  %v563_v12 = vpack.c.bf16 (!%p190_p9), %v224_v5, %v223_v2  ;;  %v315_v14 = vld [vmem:[%s902_s3 + $0x20] sm:$0xff] (!%p190_p9)  ;;  %s213_s26 = sand.u32 (!%p190_p9), 1, %s687_s19   ;;  %s488_s8 = sshll.u32 (!%p190_p9), %s752_s22, 7 }
  0x10   : > { %561 = vmatpush3.bf16.msra.mxu0 (!%p190_p9), %v560_v4  ;;  %v569_v13 = vpack.c.bf16 (!%p190_p9), %v314_v11, %v313_v10  ;;  %v316_v15 = vld [vmem:[%s902_s3 + $0x28] sm:$0xff] (!%p190_p9)  ;;  %v317_v18 = vld [vmem:[%s902_s3 + $0x30] sm:$0xff] (!%p190_p9)  ;;  %v318_v19 = vld [vmem:[%s902_s3 + $0x38] sm:$0xff] (!%p190_p9)  ;;  %s406_s14 = scalar_lea.sflag (!%p190_p9), [#allocation3], %s213_s26 }
  0x11   : > { %562 = vmatprep.subr.bf16.mxu0 (!%p190_p9), %v697_v3  ;;  %567 = vmatpush3.bf16.msra.mxu1 (!%p190_p9), %v566_v9  ;;  %v572_v17 = vpack.c.bf16 (!%p190_p9), %v316_v15, %v315_v14  ;;  %v575_v20 = vpack.c.bf16 (!%p190_p9), %v318_v19, %v317_v18  ;;  %v319_v21 = vld [vmem:[%s902_s3 + $0x40] sm:$0xff] (!%p190_p9)  ;;  %v320_v22 = vld [vmem:[%s902_s3 + $0x48] sm:$0xff] (!%p190_p9)  ;;  %v321_v24 = vld [vmem:[%s902_s3 + $0x50] sm:$0xff] (!%p190_p9) }
  0x12   : > { %568 = vmatprep.subr.bf16.mxu1 (!%p190_p9), %v697_v3  ;;  %v578_v23 = vpack.c.bf16 (!%p190_p9), %v320_v22, %v319_v21  ;;  %v322_v25 = vld [vmem:[%s902_s3 + $0x58] sm:$0xff] (!%p190_p9)  ;;  %v323_v27 = vld [vmem:[%s902_s3 + $0x60] sm:$0xff] (!%p190_p9)  ;;  %v324_v28 = vld [vmem:[%s902_s3 + $0x68] sm:$0xff] (!%p190_p9) }
  0x13   : > { %v581_v26 = vpack.c.bf16 (!%p190_p9), %v322_v25, %v321_v24  ;;  %v584_v29 = vpack.c.bf16 (!%p190_p9), %v324_v28, %v323_v27  ;;  %v325_v30 = vld [vmem:[%s902_s3 + $0x70] sm:$0xff] (!%p190_p9)  ;;  %v326_v31 = vld [vmem:[%s902_s3 + $0x78] sm:$0xff] (!%p190_p9)  ;;  %v484_v33 = vld [vmem:[%s901_s2] ss:$0 sm:$0xff] (!%p190_p9) }
  0x14   : > { %564 = vmatpush3.bf16.msra.mxu0 (!%p190_p9), %v563_v12  ;;  %v587_v32 = vpack.c.bf16 (!%p190_p9), %v326_v31, %v325_v30  ;;  %v486_v42 = vld [vmem:[%s903_s4] ss:$0 sm:$0xff] (!%p190_p9) }
  0x15   : > { %s217_s30 = scalar_select %p216_p10, %s752_s22, 1  ;;  %570 = vmatpush3.bf16.msra.mxu1 %v569_v13 }
  0x16   : > { %571 = vmatprep.subr.bf16.mxu1 %v697_v3  ;;  %s700_s22 = smov [#allocation2]  }
  0x17   : > { %s483_s6 = sshll.u32 %s217_s30, 3  ;;  %s482_s30 = sshll.u32 %s213_s26, 3 }
  0x18   : > { %s219_s13 = scalar_lea.vmem %s899_s0, %s483_s6  ;;  %s215_s9 = scalar_lea.vmem [#allocation2], %s482_s30 }
  0x19   : > { %v220_v16 = vld [vmem:[%s219_s13] sm:$0xff]  ;;  %573 = vmatpush3.bf16.msra.mxu1 %v572_v17  ;;  %s419_s10 = sshll.u32 %s215_s9, 4  ;;  %s856_s13 = scalar_lea.hbm %s904_s5, %s488_s8  ;;  %s858_s10 = int_to_ptr.vmem [resolvable:$true] %s419_s10 }
  0x1a   : > { %522 = vmatmul.mubr.msk.f32.vlgmr.msra.gmra.mrb[0].mxu0 %vm232_vm1, %v220_v16  ;;  %574 = vmatprep.subr.bf16.mxu1 %v697_v3  ;;  %s633_s15 = scalar_lea.vmem %s858_s10, 128  ;;  %s637_s16 = sshll.u32 %s700_s22, 4  ;;  %s638_s16 = int_to_ptr.vmem [resolvable:$false] %s637_s16 }
  0x1b   : > { %p634_p11 = scmp.ne.s32.totalorder %s858_s10, %s633_s15  ;;  %s639_s17 = scalar_lea.vmem %s638_s16, 256 }
  0x1c   : > { %p640_p0 = scmp.lt.s32.totalorder %s858_s10, %s638_s16  ;;  %p641_p1 = scmp.lt.s32.totalorder %s639_s17, %s633_s15 }
  0x1d   : > { %576 = vmatpush3.bf16.msra.mxu1 %v575_v20  ;;  %p635_p12 = pnand %p634_p11, %p769_p5 }
  0x1e   : > { %577 = vmatprep.subr.bf16.mxu1 %v697_v3  ;;  %p642_p2 = por %p641_p1, %p640_p0 }
  0x1f   : > { %p636_p13 = pneg %p635_p12 }
  0x21   : > { %579 = vmatpush3.bf16.msra.mxu1 %v578_v23  ;;  %p643_p3 = pnand %p642_p2, %p636_p13 }
  0x22   : > { %580 = vmatprep.subr.bf16.mxu1 %v697_v3 }
  0x25   : > { %582 = vmatpush3.bf16.msra.mxu1 %v581_v26 }
  0x26   : > { %583 = vmatprep.subr.bf16.mxu1 %v697_v3 }
  0x29   : > { %585 = vmatpush3.bf16.msra.mxu1 %v584_v29 }
  0x2a   : > { %586 = vmatprep.subr.bf16.mxu1 %v697_v3 }
  0x2d   : > { %588 = vmatpush3.bf16.msra.mxu1 %v587_v32 }
  0xed   : > { %v302_v34 = vpop.f32.mrb[0].mxu0 }
  0xee   : > { %v303_v35 = vadd.f32 %v484_v33, %v302_v34  ;;  %v523_v36 = vpop.f32.mrb[1].mxu0 }
  0xf0   : > { %v307_v37 = vmul.f32 0.70710677, %v303_v35  ;;  %v306_v39 = vmul.f32 0.5, %v303_v35 }
  0xf2   : > { %631 = verf.f32 %v307_v37 }
  0xfc   : > { %v632_v38 = vpop.eup %631 }
  0xfd   : > { %v309_v40 = vadd.f32 1.0, %v632_v38 }
  0xff   : > { %v310_v41 = vmul.f32 %v309_v40, %v306_v39 }
 0x101   : > { %557 = vmatmul.mubr.f32.vlgmr.msra.gmra.mrb[0].mxu1 %v310_v41 }
 0x1d4   : > { %v400_v43 = vpop.f32.mrb[0].mxu1 }
 0x1d5   : > { %v401_v44 = vadd.f32 %v486_v42, %v400_v43  ;;  %v558_v45 = vpop.f32.mrb[1].mxu1 }
 0x1d7   : > { %404 = vst.msk [vmem:[%s215_s9] sm:$0xff] %vm232_vm1, %v401_v44 }
 0x1d8   : > { %646 = shalt.err (!%p643_p3)
}
 0x1d9   : > { %s647_s23 = scalar_lea.hbm %s856_s13, 128  ;;  %s651_s30 = scalar_lea.hbm %s904_s5, 256 }
 0x1da   : > { %p648_p4 = scmp.ne.s32.totalorder %s856_s13, %s647_s23  ;;  %p652_p9 = scmp.lt.u32.totalorder %s856_s13, %s904_s5 }
 0x1db   : > { %p653_p10 = scmp.lt.u32.totalorder %s651_s30, %s647_s23  ;;  %p655_p12 = scmp.lt.u32.totalorder %s647_s23, %s856_s13 }
 0x1dc   : > { %p649_p7 = pnand %p648_p4, %p769_p5 }
 0x1dd   : > { %p654_p11 = por %p653_p10, %p652_p9 }
 0x1de   : > { %p650_p8 = pneg %p649_p7 }
 0x1df   : > { %p656_p13 = por %p655_p12, %p654_p11 }
 0x1e1   : > { %p657_p0 = pnand %p656_p13, %p650_p8 }
 0x1e3   : > { %660 = shalt.err (!%p657_p0)
}
 0x1e4   : > { %589 = dma.vmem_to_hbm [thread:$0]  (%p769_p5), %s858_s10, 128, %s856_s13, %s406_s14  }
 0x1e5 PF: > { %p595_p1 = scmp.ge.s32.totalorder %s695_s21, 2  ;;  %s431_s8 = sand.u32 1, %s683_s18  }
 0x1e6   : > { %s432_s9 = scalar_lea.sflag [#allocation3], %s431_s8 }
 0x1e7   : > { %p592_p2 = pnand %p595_p1, %p773_p6 }
 0x1e9   : > { %678 = dma.done.wait (!%p592_p2), %s432_s9, 128  }
 0x1ea   : > { %680 = vsyncadd (!%p592_p2), %s432_s9, 4294967168  ;;  %p15_p3 = scmp.ge.s32.totalorder %s756_s24, 4   ;;  %s907_s18 = smov %s687_s19 }
 0x1eb   : > { %s908_s19 = smov %s691_s20  ;;  %s909_s20 = smov %s767_s27 }
 0x1ec   : > { %s910_s21 = smov %s756_s24  ;;  %17 = sbr.rel (!%p15_p3) target bundleno = 3 (0x3), region = 75 }
 0x1f3   :  { %437 = vsyncpa [#allocation3], 1 }
 0x1f4   :  { %439 = vsyncpa [#allocation3 + $0x1], 1 }

</bundles_post_ra>
